<compile_context>
chip_gen: v5e
topology: v5e:2x2
jax: 0.10.0
libtpu: 0.0.40
codegen_flags: <defaults>
</compile_context>

<pallas_src>
import math

import jax
import jax.numpy as jnp
from jax.experimental import pallas as pl
from jax.experimental.pallas import tpu as pltpu

LN_EPS = 1e-12      # BERT LayerNorm eps
NEG_INF = -1e9      # additive attention-mask value for padded positions


# ---------------------------------------------------------------------------
# Generation-aware configuration (VMEM limit + tile preferences)
# ---------------------------------------------------------------------------
def _hw_config():
    cap = 0
    try:
        cap = int(getattr(pltpu.get_tpu_info(), "vmem_capacity_bytes", 0))
    except Exception:
        cap = 0
    if cap >= 128 * 1024 * 1024:
        # v5e / v6e: 128 MiB physical VMEM -> raise scoped limit, big tiles.
        return {"vmem_limit": 96 * 1024 * 1024,
                "lin_tm": 2048, "lin_tn": 2048, "lin_tk": 512,
                "ln_tm": 2048, "ffn_tm": 2048, "ffn_tj": 512}
    # v7x (64 MiB per TC) or unknown: stay conservative (also correct on
    # v5e/v6e, just slightly smaller tiles).
    return {"vmem_limit": 48 * 1024 * 1024,
            "lin_tm": 1024, "lin_tn": 1024, "lin_tk": 512,
            "ln_tm": 2048, "ffn_tm": 1024, "ffn_tj": 512}


_CFG = _hw_config()


def _gelu(x):
    c = math.sqrt(2.0 / math.pi)
    return 0.5 * x * (1.0 + jnp.tanh(c * (x + 0.044715 * x * x * x)))


def _pick_lane_tile(dim, pref):
    """Largest multiple-of-128 divisor of `dim` that is <= pref; full-dim
    fallback (always legal) only hits for small / toy shapes."""
    if dim <= pref:
        return dim
    t = (pref // 128) * 128
    while t >= 128:
        if dim % t == 0:
            return t
        t -= 128
    return dim


def _row_tile(M, pref, align=16):
    """Row tile + padded row count.  align=16 keeps bf16 rows on the native
    (16,128) tiling.  The caller zero-pads rows (sliced off the output), so no
    full-extent fallback block can exceed the scoped VMEM limit."""
    if M <= pref:
        return M, M                       # single full-extent block is legal
    tm = max(align, (pref // align) * align)
    return tm, pl.cdiv(M, tm) * tm


def _pad_rows(x, Mp):
    if x.shape[0] == Mp:
        return x
    return jnp.pad(x, ((0, Mp - x.shape[0]), (0, 0)))


# ---------------------------------------------------------------------------
# Tiled linear kernel: y = x @ w + b   (used for the fused QKV projection)
# ---------------------------------------------------------------------------
def _linear_kernel(x_ref, w_ref, b_ref, o_ref, acc_ref):
    k = pl.program_id(2)

    @pl.when(k == 0)
    def _():
        acc_ref[...] = jnp.zeros_like(acc_ref)

    acc_ref[...] += jnp.dot(x_ref[...], w_ref[...],
                            preferred_element_type=jnp.float32)

    @pl.when(k == pl.num_programs(2) - 1)
    def _():
        o_ref[...] = (acc_ref[...] + b_ref[...]).astype(o_ref.dtype)


def linear(x, w, b, out_dtype=jnp.bfloat16):
    """y = x @ w + b; x:(M,K) bf16, w:(K,N) bf16, b:(N,) f32."""
    M, K = x.shape
    N = w.shape[1]
    tm, Mp = _row_tile(M, _CFG["lin_tm"])
    tn = _pick_lane_tile(N, _CFG["lin_tn"])
    tk = _pick_lane_tile(K, _CFG["lin_tk"])
    xp = _pad_rows(x, Mp)
    grid = (Mp // tm, N // tn, K // tk)

    cost = pl.CostEstimate(
        flops=2 * Mp * N * K, transcendentals=0,
        bytes_accessed=(Mp * K + K * N) * 2
                       + Mp * N * jnp.dtype(out_dtype).itemsize + 4 * N)

    out = pl.pallas_call(
        _linear_kernel,
        grid_spec=pltpu.PrefetchScalarGridSpec(
            num_scalar_prefetch=0,
            grid=grid,
            in_specs=[
                pl.BlockSpec((tm, tk), lambda i, j, k: (i, k)),
                pl.BlockSpec((tk, tn), lambda i, j, k: (k, j)),
                pl.BlockSpec((1, tn), lambda i, j, k: (0, j)),
            ],
            out_specs=pl.BlockSpec((tm, tn), lambda i, j, k: (i, j)),
            scratch_shapes=[pltpu.VMEM((tm, tn), jnp.float32)],
        ),
        out_shape=jax.ShapeDtypeStruct((Mp, N), out_dtype),
        compiler_params=pltpu.CompilerParams(
            dimension_semantics=("parallel", "parallel", "arbitrary"),
            vmem_limit_bytes=_CFG["vmem_limit"]),
        cost_estimate=cost,
    )(xp, w, b.reshape(1, N).astype(jnp.float32))
    return out[:M] if Mp != M else out


# ---------------------------------------------------------------------------
# Fused linear + residual-add + LayerNorm:  y = LN(x @ w + b + residual)
# (attention output projection).  N (=H) kept as one full block -> exact stats.
# ---------------------------------------------------------------------------
def _linear_ln_kernel(x_ref, w_ref, b_ref, r_ref, g_ref, bt_ref, o_ref, acc_ref):
    k = pl.program_id(1)

    @pl.when(k == 0)
    def _():
        acc_ref[...] = jnp.zeros_like(acc_ref)

    acc_ref[...] += jnp.dot(x_ref[...], w_ref[...],
                            preferred_element_type=jnp.float32)

    @pl.when(k == pl.num_programs(1) - 1)
    def _():
        h = acc_ref[...] + b_ref[...] + r_ref[...].astype(jnp.float32)
        mu = jnp.mean(h, axis=-1, keepdims=True)
        var = jnp.mean((h - mu) ** 2, axis=-1, keepdims=True)
        y = (h - mu) * jax.lax.rsqrt(var + LN_EPS) * g_ref[...] + bt_ref[...]
        o_ref[...] = y.astype(o_ref.dtype)


def linear_residual_layernorm(x, w, b, residual, gamma, beta,
                              out_dtype=jnp.bfloat16):
    M, K = x.shape
    H = w.shape[1]
    tm, Mp = _row_tile(M, _CFG["ln_tm"])
    tk = _pick_lane_tile(K, _CFG["lin_tk"])
    xp = _pad_rows(x, Mp)
    rp = _pad_rows(residual, Mp)
    grid = (Mp // tm, K // tk)

    out = pl.pallas_call(
        _linear_ln_kernel,
        grid_spec=pltpu.PrefetchScalarGridSpec(
            num_scalar_prefetch=0,
            grid=grid,
            in_specs=[
                pl.BlockSpec((tm, tk), lambda i, k: (i, k)),
                pl.BlockSpec((tk, H), lambda i, k: (k, 0)),
                pl.BlockSpec((1, H), lambda i, k: (0, 0)),
                pl.BlockSpec((tm, H), lambda i, k: (i, 0)),
                pl.BlockSpec((1, H), lambda i, k: (0, 0)),
                pl.BlockSpec((1, H), lambda i, k: (0, 0)),
            ],
            out_specs=pl.BlockSpec((tm, H), lambda i, k: (i, 0)),
            scratch_shapes=[pltpu.VMEM((tm, H), jnp.float32)],
        ),
        out_shape=jax.ShapeDtypeStruct((Mp, H), out_dtype),
        compiler_params=pltpu.CompilerParams(
            dimension_semantics=("parallel", "arbitrary"),
            vmem_limit_bytes=_CFG["vmem_limit"]),
    )(xp, w, b.reshape(1, H).astype(jnp.float32), rp,
      gamma.reshape(1, H).astype(jnp.float32),
      beta.reshape(1, H).astype(jnp.float32))
    return out[:M] if Mp != M else out


# ---------------------------------------------------------------------------
# Fully fused FFN:  y = LN(GELU(x @ wi + bi) @ wout + bout + x)
# grid (M//tm, I//tj); the (M, 4H) intermediate never touches HBM.
# The residual is x itself, so the resident x block is reused in the epilogue.
# ---------------------------------------------------------------------------
def _ffn_kernel(x_ref, wi_ref, bi_ref, wo_ref, bo_ref, g_ref, bt_ref,
                o_ref, acc_ref):
    j = pl.program_id(1)

    @pl.when(j == 0)
    def _():
        acc_ref[...] = jnp.zeros_like(acc_ref)

    h = jnp.dot(x_ref[...], wi_ref[...], preferred_element_type=jnp.float32)
    h = _gelu(h + bi_ref[...])
    acc_ref[...] += jnp.dot(h.astype(jnp.bfloat16), wo_ref[...],
                            preferred_element_type=jnp.float32)

    @pl.when(j == pl.num_programs(1) - 1)
    def _():
        y = acc_ref[...] + bo_ref[...] + x_ref[...].astype(jnp.float32)
        mu = jnp.mean(y, axis=-1, keepdims=True)
        var = jnp.mean((y - mu) ** 2, axis=-1, keepdims=True)
        y = (y - mu) * jax.lax.rsqrt(var + LN_EPS) * g_ref[...] + bt_ref[...]
        o_ref[...] = y.astype(o_ref.dtype)


def ffn_residual_layernorm(x, wi, bi, wout, bout, gamma, beta,
                           out_dtype=jnp.bfloat16):
    M, H = x.shape
    I = wi.shape[1]
    tm, Mp = _row_tile(M, _CFG["ffn_tm"])
    tj = _pick_lane_tile(I, _CFG["ffn_tj"])
    xp = _pad_rows(x, Mp)
    grid = (Mp // tm, I // tj)

    cost = pl.CostEstimate(
        flops=4 * Mp * H * I + 8 * Mp * H,
        transcendentals=Mp * I + Mp,
        bytes_accessed=(2 * Mp * H + 2 * H * I) * 2 + 8 * (I + 3 * H))

    out = pl.pallas_call(
        _ffn_kernel,
        grid_spec=pltpu.PrefetchScalarGridSpec(
            num_scalar_prefetch=0,
            grid=grid,
            in_specs=[
                pl.BlockSpec((tm, H), lambda i, j: (i, 0)),   # x (also residual)
                pl.BlockSpec((H, tj), lambda i, j: (0, j)),   # wi column block
                pl.BlockSpec((1, tj), lambda i, j: (0, j)),   # bi
                pl.BlockSpec((tj, H), lambda i, j: (j, 0)),   # wout row block
                pl.BlockSpec((1, H), lambda i, j: (0, 0)),    # bout
                pl.BlockSpec((1, H), lambda i, j: (0, 0)),    # gamma
                pl.BlockSpec((1, H), lambda i, j: (0, 0)),    # beta
            ],
            out_specs=pl.BlockSpec((tm, H), lambda i, j: (i, 0)),
            scratch_shapes=[pltpu.VMEM((tm, H), jnp.float32)],
        ),
        out_shape=jax.ShapeDtypeStruct((Mp, H), out_dtype),
        compiler_params=pltpu.CompilerParams(
            dimension_semantics=("parallel", "arbitrary"),
            vmem_limit_bytes=_CFG["vmem_limit"]),
        cost_estimate=cost,
    )(xp, wi, bi.reshape(1, I).astype(jnp.float32), wout,
      bout.reshape(1, H).astype(jnp.float32),
      gamma.reshape(1, H).astype(jnp.float32),
      beta.reshape(1, H).astype(jnp.float32))
    return out[:M] if Mp != M else out


# ---------------------------------------------------------------------------
# Plain LayerNorm (no residual) for the embedding output (bf16 in, f32 stats)
# ---------------------------------------------------------------------------
def _ln_kernel(x_ref, g_ref, b_ref, o_ref):
    h = x_ref[...].astype(jnp.float32)
    mu = jnp.mean(h, axis=-1, keepdims=True)
    var = jnp.mean((h - mu) ** 2, axis=-1, keepdims=True)
    o_ref[...] = ((h - mu) * jax.lax.rsqrt(var + LN_EPS) * g_ref[...]
                  + b_ref[...]).astype(o_ref.dtype)


def layernorm(x, gamma, beta, out_dtype=jnp.bfloat16):
    M, H = x.shape
    tm, Mp = _row_tile(M, 4096)
    xp = _pad_rows(x, Mp)
    out = pl.pallas_call(
        _ln_kernel,
        grid=(Mp // tm,),
        in_specs=[
            pl.BlockSpec((tm, H), lambda i: (i, 0)),
            pl.BlockSpec((1, H), lambda i: (0, 0)),
            pl.BlockSpec((1, H), lambda i: (0, 0)),
        ],
        out_specs=pl.BlockSpec((tm, H), lambda i: (i, 0)),
        out_shape=jax.ShapeDtypeStruct((Mp, H), out_dtype),
        compiler_params=pltpu.CompilerParams(
            dimension_semantics=("parallel",),
            vmem_limit_bytes=_CFG["vmem_limit"]),
    )(xp, gamma.reshape(1, H).astype(jnp.float32),
      beta.reshape(1, H).astype(jnp.float32))
    return out[:M] if Mp != M else out


# ---------------------------------------------------------------------------
# Multi-head self-attention on the fused QKV tensor.
# Grid = (batch, head_group); each group covers 128 output lanes (e.g. 2 heads
# of dH=64 for bert-base), so only an (S,128) context is ever live and the
# output store is 128-lane aligned.  The 1/sqrt(dH) scale is pre-folded into
# the Q projection weights, so the kernel never scales the (S,S) scores.
# ---------------------------------------------------------------------------
def _attn_kernel_factory(heads_per_group, dH, oq, ok, ov):
    def kernel(q_ref, k_ref, v_ref, m_ref, o_ref):
        mask = m_ref[0]                        # (1, S) f32 additive mask
        qb, kb, vb = q_ref[0], k_ref[0], v_ref[0]
        outs = []
        for h in range(heads_per_group):       # static unroll within the group
            q = qb[:, oq + h * dH: oq + (h + 1) * dH]
            k = kb[:, ok + h * dH: ok + (h + 1) * dH]
            v = vb[:, ov + h * dH: ov + (h + 1) * dH]
            # q @ k^T without materializing a transpose: contract last axes.
            s = jax.lax.dot_general(q, k, (((1,), (1,)), ((), ())),
                                    preferred_element_type=jnp.float32)
            s = s + mask
            s = s - jnp.max(s, axis=-1, keepdims=True)
            p = jnp.exp(s)                                     # f32 on EUP
            l = jnp.sum(p, axis=-1, keepdims=True)
            ctx = jax.lax.dot_general(p.astype(jnp.bfloat16), v,
                                      (((1,), (0,)), ((), ())),
                                      preferred_element_type=jnp.float32)
            outs.append(ctx * pl.reciprocal(l, approx=True))   # EUP reciprocal
        # Only this group's heads are live here (<= (S,128) f32); 128-aligned store.
        o_ref[0] = jnp.concatenate(outs, axis=-1).astype(o_ref.dtype)
    return kernel


def attention(qkv, add_mask, num_heads):
    """qkv: (B, S, 3H) bf16 fused projections (Q pre-scaled); mask: (B,1,S) f32."""
    B, S, H3 = qkv.shape
    H = H3 // 3
    dH = H // num_heads
    if H % 128 == 0 and dH <= 128 and 128 % dH == 0:
        # Head-group path: the same qkv array is passed three times so the
        # group's Q/K/V slabs arrive as separate 128-lane-aligned blocks.
        gw = 128
        n_groups = H // gw
        hpg = gw // dH
        blk = gw
        qmap = lambda b, g: (b, 0, g)
        kmap = lambda b, g: (b, 0, n_groups + g)
        vmap = lambda b, g: (b, 0, 2 * n_groups + g)
        oq = ok = ov = 0
    else:
        # Small-model fallback (H < 128): a sub-128-lane block on the 3H axis
        # is not legal, so use one group over all heads with the full 3H block.
        gw = H
        n_groups = 1
        hpg = num_heads
        blk = H3
        qmap = kmap = vmap = (lambda b, g: (b, 0, 0))
        oq, ok, ov = 0, H, 2 * H

    return pl.pallas_call(
        _attn_kernel_factory(hpg, dH, oq, ok, ov),
        grid=(B, n_groups),
        in_specs=[
            pl.BlockSpec((1, S, blk), qmap),
            pl.BlockSpec((1, S, blk), kmap),
            pl.BlockSpec((1, S, blk), vmap),
            pl.BlockSpec((1, 1, S), lambda b, g: (b, 0, 0)),
        ],
        out_specs=pl.BlockSpec((1, S, gw), lambda b, g: (b, 0, g)),
        out_shape=jax.ShapeDtypeStruct((B, S, H), jnp.bfloat16),
        compiler_params=pltpu.CompilerParams(
            dimension_semantics=("parallel", "parallel"),
            vmem_limit_bytes=_CFG["vmem_limit"]),
    )(qkv, qkv, qkv, add_mask)


# ---------------------------------------------------------------------------
# Fused pooler (first token, dense + tanh) + classifier head -> logits (f32)
# ---------------------------------------------------------------------------
def _pool_cls_kernel(x_ref, wp_ref, bp_ref, wc_ref, bc_ref, o_ref):
    pooled = jnp.tanh(jnp.dot(x_ref[...], wp_ref[...],
                              preferred_element_type=jnp.float32) + bp_ref[...])
    o_ref[...] = jnp.dot(pooled.astype(jnp.bfloat16), wc_ref[...],
                         preferred_element_type=jnp.float32) + bc_ref[...]


def pool_and_classify(x0, wp, bp, wc, bc):
    """x0: (B, H) bf16 first-token hidden states -> (B, n_classes) f32 logits."""
    B, H = x0.shape
    C = wc.shape[1]
    return pl.pallas_call(
        _pool_cls_kernel,
        grid=(1,),
        in_specs=[
            pl.BlockSpec((B, H), lambda i: (0, 0)),
            pl.BlockSpec((H, H), lambda i: (0, 0)),
            pl.BlockSpec((1, H), lambda i: (0, 0)),
            pl.BlockSpec((H, C), lambda i: (0, 0)),
            pl.BlockSpec((1, C), lambda i: (0, 0)),
        ],
        out_specs=pl.BlockSpec((B, C), lambda i: (0, 0)),
        out_shape=jax.ShapeDtypeStruct((B, C), jnp.float32),
        compiler_params=pltpu.CompilerParams(
            vmem_limit_bytes=_CFG["vmem_limit"]),
    )(x0, wp, bp.reshape(1, H).astype(jnp.float32),
      wc, bc.reshape(1, C).astype(jnp.float32))


# ---------------------------------------------------------------------------
# Model (parameters + forward)
# ---------------------------------------------------------------------------
def init_params(key, vocab, max_pos, type_vocab, H, n_layers, intermediate,
                num_heads, n_classes=2, std=0.02):
    keys = iter(jax.random.split(key, 8 + 8 * n_layers))

    def w32(shape):
        return std * jax.random.normal(next(keys), shape, jnp.float32)

    def zeros(n):
        return jnp.zeros((n,), jnp.float32)

    scale = 1.0 / math.sqrt(H // num_heads)

    params = {
        "word_emb": w32((vocab, H)),
        "pos_emb": w32((max_pos, H)),
        "tok_emb": w32((type_vocab, H)),
        "emb_ln_g": jnp.ones((H,), jnp.float32),
        "emb_ln_b": zeros(H),
        "layers": [],
        "wp": w32((H, H)).astype(jnp.bfloat16), "bp": zeros(H),            # pooler
        "wc": w32((H, n_classes)).astype(jnp.bfloat16), "bc": zeros(n_classes),
    }
    for _ in range(n_layers):
        wqkv = w32((H, 3 * H))
        # Fold the 1/sqrt(head_dim) attention scale into the Q projection
        # (weights + bias): mathematically identical to scaling the scores but
        # removes an (S,S) VPU multiply per head per batch in the kernel.
        wqkv = wqkv.at[:, :H].multiply(scale)
        bqkv = zeros(3 * H).at[:H].multiply(scale)
        params["layers"].append({
            "wqkv": wqkv.astype(jnp.bfloat16), "bqkv": bqkv,
            "wo": w32((H, H)).astype(jnp.bfloat16), "bo": zeros(H),
            "attn_ln_g": jnp.ones((H,), jnp.float32), "attn_ln_b": zeros(H),
            "wi": w32((H, intermediate)).astype(jnp.bfloat16), "bi": zeros(intermediate),
            "wout": w32((intermediate, H)).astype(jnp.bfloat16), "bout": zeros(H),
            "ffn_ln_g": jnp.ones((H,), jnp.float32), "ffn_ln_b": zeros(H),
        })
    return params


def bert_classifier_forward(params, input_ids, attention_mask, num_heads):
    B, S = input_ids.shape
    H = params["word_emb"].shape[1]

    # ---- embeddings (gather is glue); cast to bf16 before the LN kernel -----
    emb = (params["word_emb"][input_ids]
           + params["pos_emb"][None, :S, :]
           + params["tok_emb"][0][None, None, :])       # token_type_ids default 0
    x = layernorm(emb.reshape(B * S, H).astype(jnp.bfloat16),
                  params["emb_ln_g"], params["emb_ln_b"])          # bf16 (B*S, H)

    # ---- additive attention mask, kept (B, 1, S) (NOT replicated per head) --
    # Fully-padded rows would get a uniform softmax; harmless since padded
    # token outputs are never read downstream (only token 0 feeds the pooler).
    add_mask = ((1.0 - attention_mask.astype(jnp.float32)) * NEG_INF).reshape(B, 1, S)

    # ---- encoder layers ------------------------------------------------------
    for lp in params["layers"]:
        qkv = linear(x, lp["wqkv"], lp["bqkv"])                    # (B*S, 3H) bf16
        ctx = attention(qkv.reshape(B, S, 3 * H), add_mask, num_heads)   # (B,S,H)
        x = linear_residual_layernorm(ctx.reshape(B * S, H), lp["wo"], lp["bo"],
                                      x, lp["attn_ln_g"], lp["attn_ln_b"])
        x = ffn_residual_layernorm(x, lp["wi"], lp["bi"], lp["wout"], lp["bout"],
                                   lp["ffn_ln_g"], lp["ffn_ln_b"])

    # ---- pooler + classifier (single fused kernel) ---------------------------
    hidden = x.reshape(B, S, H)
    logits = pool_and_classify(hidden[:, 0, :], params["wp"], params["bp"],
                               params["wc"], params["bc"])
    return logits


# ---------------------------------------------------------------------------
if __name__ == "__main__":
    B, S = 2, 8                 # batch, sequence length
    H, NUM_HEADS = 32, 4        # hidden size, attention heads (head_dim = 8)
    INTERMEDIATE = 64
    N_LAYERS = 2
    VOCAB, MAX_POS, TYPE_VOCAB = 50, 16, 2

    key = jax.random.PRNGKey(0)
    k_params, k_ids = jax.random.split(key)

    params = init_params(k_params, VOCAB, MAX_POS, TYPE_VOCAB, H, N_LAYERS,
                         INTERMEDIATE, NUM_HEADS, n_classes=2)

    input_ids = jax.random.randint(k_ids, (B, S), 0, VOCAB, dtype=jnp.int32)
    attention_mask = jnp.array(
        [[1] * S,
         [1] * (S - 2) + [0, 0]], dtype=jnp.int32)     # second example is padded

    logits = bert_classifier_forward(params, input_ids, attention_mask, NUM_HEADS)
    logits = jax.block_until_ready(logits)

    assert logits.shape == (B, 2) and logits.dtype == jnp.float32
    print("KERNEL_OK")
</pallas_src>

<mosaic_0001>
module attributes {stable_mosaic.version = 11 : i64} {
  func.func @_ln_kernel(%arg0: i32, %arg1: memref<16x32xbf16, #tpu.memory_space<vmem>>, %arg2: memref<1x32xf32, #tpu.memory_space<vmem>>, %arg3: memref<1x32xf32, #tpu.memory_space<vmem>>, %arg4: memref<16x32xbf16, #tpu.memory_space<vmem>>) attributes {dimension_semantics = [#tpu.dimension_semantics<parallel>], iteration_bounds = array<i64: 1>, scalar_prefetch = 0 : i64, scratch_operands = 0 : i64, tpu.core_type = #tpu.core_type<tc>, window_params = [{transform_indices = @transform_0, window_bounds = array<i64: 16, 32>}, {pipeline_mode = #tpu.pipeline_mode<synchronous>, transform_indices = @transform_1, window_bounds = array<i64: 1, 32>}, {pipeline_mode = #tpu.pipeline_mode<synchronous>, transform_indices = @transform_2, window_bounds = array<i64: 1, 32>}, {transform_indices = @transform_3, window_bounds = array<i64: 16, 32>}]} {
    %c0 = arith.constant 0 : index
    %c0_0 = arith.constant 0 : index
    %0 = vector.load %arg1[%c0, %c0_0] : memref<16x32xbf16, #tpu.memory_space<vmem>>, vector<16x32xbf16>
    %1 = arith.extf %0 : vector<16x32xbf16> to vector<16x32xf32>
    %cst = arith.constant dense<0.000000e+00> : vector<16xf32>
    %2 = vector.multi_reduction <add>, %1, %cst [1] : vector<16x32xf32> to vector<16xf32>
    %3 = vector.shape_cast %2 : vector<16xf32> to vector<16x1xf32>
    %cst_1 = arith.constant 3.200000e+01 : f32
    %4 = vector.broadcast %cst_1 : f32 to vector<16x1xf32>
    %5 = arith.divf %3, %4 : vector<16x1xf32>
    %6 = vector.broadcast %5 : vector<16x1xf32> to vector<16x32xf32>
    %7 = arith.subf %1, %6 : vector<16x32xf32>
    %8 = arith.mulf %7, %7 : vector<16x32xf32>
    %cst_2 = arith.constant dense<0.000000e+00> : vector<16xf32>
    %9 = vector.multi_reduction <add>, %8, %cst_2 [1] : vector<16x32xf32> to vector<16xf32>
    %10 = vector.shape_cast %9 : vector<16xf32> to vector<16x1xf32>
    %cst_3 = arith.constant 3.200000e+01 : f32
    %11 = vector.broadcast %cst_3 : f32 to vector<16x1xf32>
    %12 = arith.divf %10, %11 : vector<16x1xf32>
    %13 = vector.broadcast %5 : vector<16x1xf32> to vector<16x32xf32>
    %14 = arith.subf %1, %13 : vector<16x32xf32>
    %cst_4 = arith.constant 9.99999996E-13 : f32
    %15 = vector.broadcast %cst_4 : f32 to vector<16x1xf32>
    %16 = arith.addf %12, %15 : vector<16x1xf32>
    %17 = math.rsqrt %16 : vector<16x1xf32>
    %18 = vector.broadcast %17 : vector<16x1xf32> to vector<16x32xf32>
    %19 = arith.mulf %14, %18 : vector<16x32xf32>
    %c0_5 = arith.constant 0 : index
    %c0_6 = arith.constant 0 : index
    %20 = vector.load %arg2[%c0_5, %c0_6] : memref<1x32xf32, #tpu.memory_space<vmem>>, vector<1x32xf32>
    %21 = vector.broadcast %20 : vector<1x32xf32> to vector<16x32xf32>
    %22 = arith.mulf %19, %21 : vector<16x32xf32>
    %c0_7 = arith.constant 0 : index
    %c0_8 = arith.constant 0 : index
    %23 = vector.load %arg3[%c0_7, %c0_8] : memref<1x32xf32, #tpu.memory_space<vmem>>, vector<1x32xf32>
    %24 = vector.broadcast %23 : vector<1x32xf32> to vector<16x32xf32>
    %25 = arith.addf %22, %24 : vector<16x32xf32>
    %26 = arith.truncf %25 : vector<16x32xf32> to vector<16x32xbf16>
    %c0_9 = arith.constant 0 : index
    %c0_10 = arith.constant 0 : index
    %27 = vector.load %arg4[%c0_9, %c0_10] : memref<16x32xbf16, #tpu.memory_space<vmem>>, vector<16x32xbf16>
    tpu.vector_store %arg4[%c0_9, %c0_10], %26 {strides = array<i32>} : memref<16x32xbf16, #tpu.memory_space<vmem>>, vector<16x32xbf16>,
    return
  }
  func.func @transform_0(%arg0: i32) -> (i32, i32) {
    %c0_i32 = arith.constant 0 : i32
    %c0_i32_0 = arith.constant 0 : i32
    return %arg0, %c0_i32 : i32, i32
  }
  func.func @transform_1(%arg0: i32) -> (i32, i32) {
    %c0_i32 = arith.constant 0 : i32
    %c0_i32_0 = arith.constant 0 : i32
    %c0_i32_1 = arith.constant 0 : i32
    return %c0_i32, %c0_i32_0 : i32, i32
  }
  func.func @transform_2(%arg0: i32) -> (i32, i32) {
    %c0_i32 = arith.constant 0 : i32
    %c0_i32_0 = arith.constant 0 : i32
    %c0_i32_1 = arith.constant 0 : i32
    return %c0_i32, %c0_i32_0 : i32, i32
  }
  func.func @transform_3(%arg0: i32) -> (i32, i32) {
    %c0_i32 = arith.constant 0 : i32
    %c0_i32_0 = arith.constant 0 : i32
    return %arg0, %c0_i32 : i32, i32
  }
}

</mosaic_0001>

<bundles_post_ra>
// kernel: tpu_custom_call.1
= control target key start
LH: loop header
LB: loop body
LE: loop exit
PB: predicated region body
PF: predicated region fallthrough
CT: control target
= control target key end

     0   :  { %8 = vsyncpa [#allocation3], 0  ;;  %s282_s0 = inlined_call_operand.hbm [shape: bf16[16,32], index: 0, kind: input, shape index: {}]   ;;  %s283_s1 = inlined_call_operand.hbm [shape: f32[1,32], index: 1, kind: input, shape index: {}]   ;;  %s284_s2 = inlined_call_operand.vmem [shape: f32[1,32], index: 2, kind: input, shape index: {}]   ;;  %s285_s3 = inlined_call_operand.hbm [shape: bf16[16,32], index: 3, kind: output, shape index: {}]  }
   0x1   :  { %9 = vsyncpa [#allocation6], 0 }
   0x2   :  { %10 = vsyncpa [#allocation4], 0  ;;  %s15_s14 = sshll.u32 %s282_s0, 4  ;;  %s234_s15 = smov [#allocation2]   ;;  %s16_s14 = int_to_ptr.hbm [resolvable:$true] %s15_s14 }
   0x3   :  { %s17_s16 = sshll.u32 %s234_s15, 4  ;;  %s29_s19 = sshll.u32 %s283_s1, 4  ;;  %s18_s16 = int_to_ptr.vmem [resolvable:$true] %s17_s16  ;;  %s30_s19 = int_to_ptr.hbm [resolvable:$true] %s29_s19 }
   0x4   :  { %s235_s20 = smov 64   ;;  %s236_s21 = smov 4  }
   0x5   :  { %23 = dma.hbm_to_vmem [thread:$0]  %s16_s14, 128, %s18_s16, [#allocation3], %s235_s20, %s235_s20, %s236_s21  }
   0x6   :  { %s237_s22 = smov [#allocation5]  }
   0x7   :  { %s31_s23 = sshll.u32 %s237_s22, 4  ;;  %s32_s23 = int_to_ptr.vmem [resolvable:$true] %s31_s23 }
   0x8   :  { %34 = dma.hbm_to_vmem [thread:$0]  %s30_s19, 16, %s32_s23, [#allocation6]  }
   0x9   :  { %228 = dma.done.wait [#allocation3], 128  }
   0xa   :  { %229 = vsyncadd [#allocation3], 4294967168 }
   0xb   :  { %230 = dma.done.wait [#allocation6], 16  }
   0xc   :  { %231 = vsyncadd [#allocation6], 4294967280  ;;  %v139_v0 = vld [vmem:[#allocation2] sm:$0xff]   ;;  %vm49_vm0 = vcmask 261120   ;;  %v238_v5 = vmov 32.0   ;;  %vm115_vm7 = vcmask 257024  }
   0xd   :  { %v140_v1 = vunpack.c.l.bf16 %v139_v0  ;;  %v141_v3 = vunpack.c.h.bf16 %v139_v0  ;;  %150 = vrcp.f32 %v238_v5  ;;  %v148_v36 = vld [vmem:[#allocation5] ss:$0 sm:$0xff]  ;;  %v149_v40 = vld [vmem:[%s284_s2] ss:$0 sm:$0xff]  ;;  %s239_s24 = smov [#allocation7]   ;;  %s124_s2 = sshll.u32 %s285_s3, 4  ;;  %s125_s2 = int_to_ptr.hbm [resolvable:$true] %s124_s2 }
   0xe   :  { %s122_s25 = sshll.u32 %s239_s24, 4  ;;  %s123_s25 = int_to_ptr.vmem [resolvable:$true] %s122_s25 }
   0xf   :  { %v50_v2 = vsel %vm49_vm0, %v140_v1, 0.0  ;;  %v53_v4 = vsel %vm49_vm0, %v141_v3, 0.0 }
  0x10   :  { %51 = vadd.xlane.f32.xlu0 %v50_v2 }
  0x13   :  { %v151_v6 = vpop.eup %150 }
  0x14   :  { %v57_v7 = vmul.f32 32.0, %v151_v6  ;;  %vm61_vm1 = vweird.f32 %v151_v6 }
  0x16   :  { %v58_v8 = vsub.f32 1.0, %v57_v7 }
  0x18   :  { %54 = vadd.xlane.f32.xlu0 %v53_v4  ;;  %v59_v9 = vmul.f32 %v151_v6, %v58_v8 }
  0x1a   :  { %v60_v10 = vadd.f32 %v151_v6, %v59_v9 }
  0x1c   :  { %v62_v11 = vsel %vm61_vm1, %v151_v6, %v60_v10 }
  0x83   :  { %v52_v12 = vpop.xlane.xlu0 %51 }
  0x84   :  { %v63_v13 = vmul.f32 %v62_v11, %v52_v12 }
  0x86   :  { %v65_v14 = vsub.f32 %v140_v1, %v63_v13 }
  0x88   :  { %v67_v15 = vmul.f32 %v65_v14, %v65_v14 }
  0x8a   :  { %v69_v16 = vsel %vm49_vm0, %v67_v15, 0.0 }
  0x8b   :  { %70 = vadd.xlane.f32.xlu1 %v69_v16  ;;  %v55_v17 = vpop.xlane.xlu0 %54 }
  0x8c   :  { %v64_v18 = vmul.f32 %v62_v11, %v55_v17 }
  0x8e   :  { %v66_v19 = vsub.f32 %v141_v3, %v64_v18 }
  0x90   :  { %v68_v20 = vmul.f32 %v66_v19, %v66_v19 }
  0x92   :  { %v72_v21 = vsel %vm49_vm0, %v68_v20, 0.0 }
  0x93   :  { %73 = vadd.xlane.f32.xlu1 %v72_v21 }
  0xfe   :  { %v71_v22 = vpop.xlane.xlu1 %70 }
  0xff   :  { %v75_v23 = vmul.f32 %v71_v22, %v62_v11 }
 0x101   :  { %v77_v24 = vadd.f32 1e-12, %v75_v23 }
 0x103   :  { %152 = vrsqrt.f32 %v77_v24  ;;  %vm85_vm3 = vweird.f32 %v77_v24 }
 0x106   :  { %v74_v25 = vpop.xlane.xlu1 %73 }
 0x107   :  { %v76_v26 = vmul.f32 %v74_v25, %v62_v11 }
 0x109   :  { %v153_v27 = vpop.eup %152  ;;  %v78_v28 = vadd.f32 1e-12, %v76_v26 }
 0x10a   :  { %v80_v29 = vmul.f32 %v153_v27, %v77_v24  ;;  %vm86_vm2 = vweird.f32 %v153_v27 }
 0x10b   :  { %154 = vrsqrt.f32 %v78_v28  ;;  %vm87_vm4 = vmor %vm85_vm3, %vm86_vm2  ;;  %vm95_vm6 = vweird.f32 %v78_v28 }
 0x10c   :  { %v81_v30 = vmul.f32 %v153_v27, %v80_v29 }
 0x10e   :  { %v82_v31 = vmul.f32 0.5, %v81_v30 }
 0x110   :  { %v83_v32 = vsub.f32 1.5, %v82_v31 }
 0x111   :  { %v155_v33 = vpop.eup %154 }
 0x112   :  { %v84_v34 = vmul.f32 %v153_v27, %v83_v32  ;;  %v90_v35 = vmul.f32 %v155_v33, %v78_v28  ;;  %vm96_vm5 = vweird.f32 %v155_v33 }
 0x113   :  { %vm97_vm8 = vmor %vm95_vm6, %vm96_vm5 }
 0x114   :  { %v88_v37 = vsel %vm87_vm4, %v153_v27, %v84_v34  ;;  %v91_v38 = vmul.f32 %v155_v33, %v90_v35 }
 0x115   :  { %v99_v39 = vmul.f32 %v88_v37, %v65_v14 }
 0x116   :  { %v92_v41 = vmul.f32 0.5, %v91_v38 }
 0x117   :  { %v105_v42 = vmul.f32 %v148_v36, %v99_v39 }
 0x118   :  { %v93_v43 = vsub.f32 1.5, %v92_v41 }
 0x119   :  { %v111_v44 = vadd.f32 %v149_v40, %v105_v42 }
 0x11a   :  { %v94_v45 = vmul.f32 %v155_v33, %v93_v43 }
 0x11b   :  { %v113_v46 = vpack.c.bf16 %v111_v44, %v111_v44 }
 0x11c   :  { %v98_v47 = vsel %vm97_vm8, %v155_v33, %v94_v45 }
 0x11d   :  { %v100_v48 = vmul.f32 %v98_v47, %v66_v19  ;;  %116 = vst.msk [vmem:[#allocation7] sm:$0xf] %vm115_vm7, %v113_v46 }
 0x11f   :  { %v106_v49 = vmul.f32 %v148_v36, %v100_v48 }
 0x121   :  { %v112_v50 = vadd.f32 %v149_v40, %v106_v49 }
 0x123   :  { %v114_v51 = vpack.c.bf16 %v112_v50, %v112_v50 }
 0x125   :  { %117 = vst.msk [vmem:[#allocation7 + $0x4] sm:$0xf] %vm115_vm7, %v114_v51 }
 0x126   :  { %130 = dma.vmem_to_hbm [thread:$0]  %s123_s25, 128, %s125_s2, [#allocation4], %s235_s20, %s235_s20, %s236_s21  }
 0x127   :  { %232 = dma.done.wait [#allocation4], 128  }
 0x128   :  { %233 = vsyncadd [#allocation4], 4294967168 }
 0x129   :  { %135 = vsyncpa [#allocation3], 1 }
 0x12a   :  { %136 = vsyncpa [#allocation6], 1 }
 0x12b   :  { %137 = vsyncpa [#allocation4], 1 }

</bundles_post_ra>
